<compile_context>
chip_gen: v7x
topology: tpu7x:2x2x1
jax: 0.10.0
libtpu: 0.0.40
codegen_flags: <defaults>
</compile_context>

<pallas_src>
import jax
import jax.numpy as jnp
from jax import lax
from jax.experimental import pallas as pl
from jax.experimental.pallas import tpu as pltpu

SEQ_LEN = 8
EMBED_DIM = 64
N_HEADS = 2
HEAD_DIM = EMBED_DIM // N_HEADS
MLP_DIM = 4 * EMBED_DIM
LN_EPS = 1e-5
MAX_ROWS_PER_CHUNK = 2048   # keeps f32 intermediates well inside v5e's scoped VMEM


def _layer_norm(x, gamma, beta):
    mean = jnp.mean(x, axis=-1, keepdims=True)
    var = jnp.mean(x * x, axis=-1, keepdims=True) - mean * mean
    return (x - mean) * lax.rsqrt(var + LN_EPS) * gamma + beta


def _gelu_exact(x):
    return 0.5 * x * (1.0 + lax.erf(x / jnp.sqrt(2.0).astype(x.dtype)))


def block_kernel(x_ref,
                 w_qkv_ref, b_qkv_ref,
                 w_out_ref, b_out_ref,
                 ln1_g_ref, ln1_b_ref,
                 w_fc1_ref, b_fc1_ref,
                 w_fc2_ref, b_fc2_ref,
                 ln2_g_ref, ln2_b_ref,
                 o_ref,
                 ctx_scr):
    BB, S, E = x_ref.shape
    T = BB * S
    # Token-flattened activations (batch-major). Pure leading-dim merge:
    # second-to-last dim stays sublane-aligned, no relayout.
    x = x_ref[...].reshape(T, E)

    # ---- fused QKV projection (weights pre-transposed; Q scale pre-folded) ----
    qkv = jnp.dot(x, w_qkv_ref[...], preferred_element_type=jnp.float32) + b_qkv_ref[...]

    # PyTorch float attn_mask semantics: tril(ones) ADDED to scores.
    row = lax.broadcasted_iota(jnp.int32, (S, S), 0)
    col = lax.broadcasted_iota(jnp.int32, (S, S), 1)
    attn_mask = jnp.where(col <= row, 1.0, 0.0).astype(jnp.float32)

    for h in range(N_HEADS):                              # static, tiny loop (2 heads)
        lo = h * HEAD_DIM
        q_h = qkv[:, lo:lo + HEAD_DIM].reshape(BB, S, HEAD_DIM)
        k_h = qkv[:, E + lo:E + lo + HEAD_DIM].reshape(BB, S, HEAD_DIM)
        v_h = qkv[:, 2 * E + lo:2 * E + lo + HEAD_DIM].reshape(BB, S, HEAD_DIM)
        s = jnp.einsum("bqd,bkd->bqk", q_h, k_h,
                       preferred_element_type=jnp.float32) + attn_mask
        s = s - jnp.max(s, axis=-1, keepdims=True)
        p = jnp.exp(s)
        # attention-weight dropout: identity (eval semantics)
        p = p * pl.reciprocal(jnp.sum(p, axis=-1, keepdims=True), approx=False)
        ctx_h = jnp.einsum("bqk,bkd->bqd", p, v_h,
                           preferred_element_type=jnp.float32).reshape(T, HEAD_DIM)
        # Place this head's context at its lane offset in the scratch (masked store).
        ctx_scr[:, lo:lo + HEAD_DIM] = ctx_h

    # Single fused out-projection (one K=E MXU push instead of two K=E/2 pushes).
    attn = jnp.dot(ctx_scr[...], w_out_ref[...],
                   preferred_element_type=jnp.float32) + b_out_ref[...]

    # ---- residual + LayerNorm 1 ----
    y = _layer_norm(attn + x, ln1_g_ref[...], ln1_b_ref[...])

    # ---- MLP: Linear -> GELU(exact) -> Linear -> Dropout(identity) ----
    h1 = jnp.dot(y, w_fc1_ref[...], preferred_element_type=jnp.float32) + b_fc1_ref[...]
    h1 = _gelu_exact(h1)
    h2 = jnp.dot(h1, w_fc2_ref[...], preferred_element_type=jnp.float32) + b_fc2_ref[...]
    # TODO(synk): train-mode Dropout(p=0.1) omitted (eval semantics); torch RNG not reproducible.

    # ---- residual + LayerNorm 2 ----
    o_ref[...] = _layer_norm(h2 + y, ln2_g_ref[...], ln2_b_ref[...]).reshape(BB, S, E)


def prepare_block_weights(params):
    """One-time weight prep: pre-transpose every matrix and fold the
    1/sqrt(head_dim) attention scale into the Q third of in_proj weight/bias."""
    E = EMBED_DIM
    scale = 1.0 / (HEAD_DIM ** 0.5)
    w_qkv = params["in_proj_w"].T.astype(jnp.float32)          # (E, 3E)
    b_qkv = params["in_proj_b"].astype(jnp.float32)            # (1, 3E)
    w_qkv = w_qkv.at[:, :E].multiply(scale)
    b_qkv = b_qkv.at[:, :E].multiply(scale)
    return (
        w_qkv, b_qkv,
        params["out_proj_w"].T, params["out_proj_b"],          # (E, E), (1, E)
        params["ln1_g"], params["ln1_b"],
        params["fc1_w"].T, params["fc1_b"],                    # (E, 4E), (1, 4E)
        params["fc2_w"].T, params["fc2_b"],                    # (4E, E), (1, E)
        params["ln2_g"], params["ln2_b"],
    )


def _choose_chunking(B, S):
    """Balanced chunking: as few grid steps as the VMEM row cap allows, kept at
    an even count (>= 2) so both v7x TensorCores get work, and BB = ceil(B/n)
    so padding waste is minimal."""
    bb_cap = max(1, MAX_ROWS_PER_CHUNK // S)
    n = pl.cdiv(B, bb_cap)
    if B >= 2:
        n = max(n, 2)
        if n % 2:
            n += 1
    bb = pl.cdiv(B, n)
    n = pl.cdiv(B, bb)
    return bb, n


def block_forward(x_sbe, weights, block_batch=None):
    """x_sbe: (S, B, E) float32 (PyTorch batch_first=False layout). Returns (S, B, E)."""
    S, B, E = x_sbe.shape
    if block_batch is None:
        BB, n_chunks = _choose_chunking(B, S)
    else:
        BB, n_chunks = block_batch, pl.cdiv(B, block_batch)
    B_pad = BB * n_chunks

    x_bse = jnp.transpose(x_sbe, (1, 0, 2))                    # (B, S, E) kernel layout
    if B_pad != B:
        x_bse = jnp.pad(x_bse, ((0, B_pad - B), (0, 0), (0, 0)))

    out = pl.pallas_call(
        block_kernel,
        out_shape=jax.ShapeDtypeStruct((B_pad, S, E), jnp.float32),
        grid=(n_chunks,),
        in_specs=[pl.BlockSpec((BB, S, E), lambda b: (b, 0, 0))] +
                 [pl.BlockSpec(w.shape, lambda b: (0, 0)) for w in weights],
        out_specs=pl.BlockSpec((BB, S, E), lambda b: (b, 0, 0)),
        scratch_shapes=[pltpu.VMEM((BB * S, EMBED_DIM), jnp.float32)],
        compiler_params=pltpu.CompilerParams(
            dimension_semantics=("parallel",),                 # megacore sharding on v7x
            vmem_limit_bytes=32 * 1024 * 1024),                # headroom over v5e 16 MiB default
    )(x_bse, *weights)

    if B_pad != B:
        out = out[:B]
    return jnp.transpose(out, (1, 0, 2))


# ------------------------- pure-JAX reference ----------------------------
def reference(x_sbe, p):
    x = jnp.transpose(x_sbe, (1, 0, 2))                        # (B, S, E)
    B, S, E = x.shape
    qkv = jnp.einsum("bse,fe->bsf", x, p["in_proj_w"]) + p["in_proj_b"][0]
    q, k, v = jnp.split(qkv, 3, axis=-1)

    def split_heads(t):
        return t.reshape(B, S, N_HEADS, HEAD_DIM).transpose(0, 2, 1, 3)

    qh, kh, vh = map(split_heads, (q, k, v))
    mask = jnp.tril(jnp.ones((S, S), jnp.float32))             # float mask, ADDED to scores
    scores = jnp.einsum("bhqd,bhkd->bhqk", qh, kh) / jnp.sqrt(float(HEAD_DIM)) + mask
    attn = jax.nn.softmax(scores, axis=-1)
    a = jnp.einsum("bhqk,bhkd->bhqd", attn, vh).transpose(0, 2, 1, 3).reshape(B, S, E)
    a = a @ p["out_proj_w"].T + p["out_proj_b"][0]

    def ln(y, g, b):
        m = jnp.mean(y, axis=-1, keepdims=True)
        var = jnp.mean((y - m) ** 2, axis=-1, keepdims=True)
        return (y - m) / jnp.sqrt(var + LN_EPS) * g + b

    x = ln(a + x, p["ln1_g"][0], p["ln1_b"][0])
    h = x @ p["fc1_w"].T + p["fc1_b"][0]
    h = 0.5 * h * (1.0 + jax.scipy.special.erf(h / jnp.sqrt(2.0)))
    h = h @ p["fc2_w"].T + p["fc2_b"][0]
    x = ln(h + x, p["ln2_g"][0], p["ln2_b"][0])
    return jnp.transpose(x, (1, 0, 2))


def make_params(key):
    ks = jax.random.split(key, 8)

    def init(k, shape, scale=0.05):
        return (scale * jax.random.normal(k, shape)).astype(jnp.float32)

    E = EMBED_DIM
    return {
        "in_proj_w": init(ks[0], (3 * E, E)),
        "in_proj_b": init(ks[1], (1, 3 * E)),
        "out_proj_w": init(ks[2], (E, E)),
        "out_proj_b": init(ks[3], (1, E)),
        "ln1_g": jnp.ones((1, E), jnp.float32),
        "ln1_b": jnp.zeros((1, E), jnp.float32),
        "fc1_w": init(ks[4], (MLP_DIM, E)),
        "fc1_b": init(ks[5], (1, MLP_DIM)),
        "fc2_w": init(ks[6], (E, MLP_DIM)),
        "fc2_b": init(ks[7], (1, E)),
        "ln2_g": jnp.ones((1, E), jnp.float32),
        "ln2_b": jnp.zeros((1, E), jnp.float32),
    }


if __name__ == "__main__":
    key = jax.random.PRNGKey(0)
    k_x1, k_x2, k_x3, k_p = jax.random.split(key, 4)

    S, E = SEQ_LEN, EMBED_DIM
    params = make_params(k_p)
    weights = prepare_block_weights(params)   # one-time host-side weight prep

    # Small shape consistent with the module (seq=8, batch=2, embed=64), layout (S, B, E).
    x1 = jax.random.normal(k_x1, (S, 2, E), dtype=jnp.float32)
    out1 = jax.block_until_ready(block_forward(x1, weights))
    ref1 = reference(x1, params)
    assert out1.shape == (S, 2, E)
    assert jnp.allclose(out1, ref1, atol=1e-4, rtol=1e-4), \
        f"max abs err {jnp.max(jnp.abs(out1 - ref1))}"

    # Larger batch: two balanced chunks of 24 (no padding waste).
    x2 = jax.random.normal(k_x2, (S, 48, E), dtype=jnp.float32)
    out2 = jax.block_until_ready(block_forward(x2, weights))
    ref2 = reference(x2, params)
    assert jnp.allclose(out2, ref2, atol=1e-4, rtol=1e-4), \
        f"max abs err {jnp.max(jnp.abs(out2 - ref2))}"

    # Odd batch exercises the padded tail-chunk path (B=5 -> BB=3, padded to 6).
    x3 = jax.random.normal(k_x3, (S, 5, E), dtype=jnp.float32)
    out3 = jax.block_until_ready(block_forward(x3, weights))
    ref3 = reference(x3, params)
    assert jnp.allclose(out3, ref3, atol=1e-4, rtol=1e-4), \
        f"max abs err {jnp.max(jnp.abs(out3 - ref3))}"

    print("KERNEL_OK")
</pallas_src>

<mosaic_0001>
module attributes {stable_mosaic.version = 11 : i64} {
  func.func @block_kernel(%arg0: i32, %arg1: memref<1x8x64xf32, #tpu.memory_space<vmem>>, %arg2: memref<64x192xf32, #tpu.memory_space<vmem>>, %arg3: memref<1x192xf32, #tpu.memory_space<vmem>>, %arg4: memref<64x64xf32, #tpu.memory_space<vmem>>, %arg5: memref<1x64xf32, #tpu.memory_space<vmem>>, %arg6: memref<1x64xf32, #tpu.memory_space<vmem>>, %arg7: memref<1x64xf32, #tpu.memory_space<vmem>>, %arg8: memref<64x256xf32, #tpu.memory_space<vmem>>, %arg9: memref<1x256xf32, #tpu.memory_space<vmem>>, %arg10: memref<256x64xf32, #tpu.memory_space<vmem>>, %arg11: memref<1x64xf32, #tpu.memory_space<vmem>>, %arg12: memref<1x64xf32, #tpu.memory_space<vmem>>, %arg13: memref<1x64xf32, #tpu.memory_space<vmem>>, %arg14: memref<1x8x64xf32, #tpu.memory_space<vmem>>, %arg15: memref<8x64xf32, #tpu.memory_space<vmem>>) attributes {dimension_semantics = [#tpu.dimension_semantics<parallel>], iteration_bounds = array<i64: 2>, scalar_prefetch = 0 : i64, scratch_operands = 1 : i64, tpu.core_type = #tpu.core_type<tc>, window_params = [{transform_indices = @transform_0, window_bounds = array<i64: 1, 8, 64>}, {pipeline_mode = #tpu.pipeline_mode<synchronous>, transform_indices = @transform_1, window_bounds = array<i64: 64, 192>}, {pipeline_mode = #tpu.pipeline_mode<synchronous>, transform_indices = @transform_2, window_bounds = array<i64: 1, 192>}, {pipeline_mode = #tpu.pipeline_mode<synchronous>, transform_indices = @transform_3, window_bounds = array<i64: 64, 64>}, {pipeline_mode = #tpu.pipeline_mode<synchronous>, transform_indices = @transform_4, window_bounds = array<i64: 1, 64>}, {pipeline_mode = #tpu.pipeline_mode<synchronous>, transform_indices = @transform_5, window_bounds = array<i64: 1, 64>}, {pipeline_mode = #tpu.pipeline_mode<synchronous>, transform_indices = @transform_6, window_bounds = array<i64: 1, 64>}, {pipeline_mode = #tpu.pipeline_mode<synchronous>, transform_indices = @transform_7, window_bounds = array<i64: 64, 256>}, {pipeline_mode = #tpu.pipeline_mode<synchronous>, transform_indices = @transform_8, window_bounds = array<i64: 1, 256>}, {pipeline_mode = #tpu.pipeline_mode<synchronous>, transform_indices = @transform_9, window_bounds = array<i64: 256, 64>}, {pipeline_mode = #tpu.pipeline_mode<synchronous>, transform_indices = @transform_10, window_bounds = array<i64: 1, 64>}, {pipeline_mode = #tpu.pipeline_mode<synchronous>, transform_indices = @transform_11, window_bounds = array<i64: 1, 64>}, {pipeline_mode = #tpu.pipeline_mode<synchronous>, transform_indices = @transform_12, window_bounds = array<i64: 1, 64>}, {transform_indices = @transform_13, window_bounds = array<i64: 1, 8, 64>}]} {
    %c0 = arith.constant 0 : index
    %c0_0 = arith.constant 0 : index
    %c0_1 = arith.constant 0 : index
    %0 = vector.load %arg1[%c0, %c0_0, %c0_1] : memref<1x8x64xf32, #tpu.memory_space<vmem>>, vector<1x8x64xf32>
    %1 = vector.shape_cast %0 : vector<1x8x64xf32> to vector<8x64xf32>
    %c0_2 = arith.constant 0 : index
    %c0_3 = arith.constant 0 : index
    %2 = vector.load %arg2[%c0_2, %c0_3] : memref<64x192xf32, #tpu.memory_space<vmem>>, vector<64x192xf32>
    %cst = arith.constant dense<0.000000e+00> : vector<8x192xf32>
    %3 = tpu.matmul %1, %2, %cst {dimension_numbers = #tpu.dot_dimension_numbers<[1], [0], [0], [1], [0, 0, 1, 1], [], []>} : vector<8x64xf32>, vector<64x192xf32>, vector<8x192xf32> -> vector<8x192xf32>
    %c0_4 = arith.constant 0 : index
    %c0_5 = arith.constant 0 : index
    %4 = vector.load %arg3[%c0_4, %c0_5] : memref<1x192xf32, #tpu.memory_space<vmem>>, vector<1x192xf32>
    %5 = vector.broadcast %4 : vector<1x192xf32> to vector<8x192xf32>
    %6 = arith.addf %3, %5 : vector<8x192xf32>
    %7 = tpu.iota {dimensions = array<i32: 0>} : vector<8x8xi32>
    %8 = tpu.iota {dimensions = array<i32: 1>} : vector<8x8xi32>
    %9 = arith.cmpi sle, %8, %7 : vector<8x8xi32>
    %cst_6 = arith.constant 1.000000e+00 : f32
    %cst_7 = arith.constant 0.000000e+00 : f32
    %10 = vector.broadcast %cst_6 : f32 to vector<8x8xf32>
    %11 = vector.broadcast %cst_7 : f32 to vector<8x8xf32>
    %12 = arith.select %9, %10, %11 : vector<8x8xi1>, vector<8x8xf32>
    %13 = vector.extract_strided_slice %6 {offsets = [0, 0], sizes = [8, 32], strides = [1, 1]} : vector<8x192xf32> to vector<8x32xf32>
    %14 = vector.shape_cast %13 : vector<8x32xf32> to vector<1x8x32xf32>
    %15 = vector.extract_strided_slice %6 {offsets = [0, 64], sizes = [8, 32], strides = [1, 1]} : vector<8x192xf32> to vector<8x32xf32>
    %16 = vector.shape_cast %15 : vector<8x32xf32> to vector<1x8x32xf32>
    %17 = vector.extract_strided_slice %6 {offsets = [0, 128], sizes = [8, 32], strides = [1, 1]} : vector<8x192xf32> to vector<8x32xf32>
    %18 = vector.shape_cast %17 : vector<8x32xf32> to vector<1x8x32xf32>
    "tpu.trace_start"() <{level = 10 : i32, message = "bqd,bkd->bqk"}> : () -> ()
    %cst_8 = arith.constant dense<0.000000e+00> : vector<1x8x8xf32>
    %19 = tpu.matmul %14, %16, %cst_8 {dimension_numbers = #tpu.dot_dimension_numbers<[2], [2], [1], [1], [0, 0, 0, 1, 1, 1], [0], [0]>} : vector<1x8x32xf32>, vector<1x8x32xf32>, vector<1x8x8xf32> -> vector<1x8x8xf32>
    "tpu.trace_stop"() : () -> ()
    %20 = vector.shape_cast %12 : vector<8x8xf32> to vector<1x8x8xf32>
    %21 = arith.addf %19, %20 : vector<1x8x8xf32>
    %cst_9 = arith.constant dense<0xFF800000> : vector<1x8xf32>
    %22 = vector.multi_reduction <maximumf>, %21, %cst_9 [2] : vector<1x8x8xf32> to vector<1x8xf32>
    %23 = vector.shape_cast %22 : vector<1x8xf32> to vector<1x8x1xf32>
    %24 = vector.broadcast %23 : vector<1x8x1xf32> to vector<1x8x8xf32>
    %25 = arith.subf %21, %24 : vector<1x8x8xf32>
    %26 = math.exp %25 : vector<1x8x8xf32>
    %cst_10 = arith.constant dense<0.000000e+00> : vector<1x8xf32>
    %27 = vector.multi_reduction <add>, %26, %cst_10 [2] : vector<1x8x8xf32> to vector<1x8xf32>
    %28 = vector.shape_cast %27 : vector<1x8xf32> to vector<1x8x1xf32>
    %29 = tpu.reciprocal %28 : vector<1x8x1xf32> -> vector<1x8x1xf32>
    %30 = vector.broadcast %29 : vector<1x8x1xf32> to vector<1x8x8xf32>
    %31 = arith.mulf %26, %30 : vector<1x8x8xf32>
    "tpu.trace_start"() <{level = 10 : i32, message = "bqk,bkd->bqd"}> : () -> ()
    %cst_11 = arith.constant dense<0.000000e+00> : vector<1x8x32xf32>
    %32 = tpu.matmul %31, %18, %cst_11 {dimension_numbers = #tpu.dot_dimension_numbers<[2], [1], [1], [2], [0, 0, 0, 1, 1, 2], [0], [0]>} : vector<1x8x8xf32>, vector<1x8x32xf32>, vector<1x8x32xf32> -> vector<1x8x32xf32>
    "tpu.trace_stop"() : () -> ()
    %33 = vector.shape_cast %32 : vector<1x8x32xf32> to vector<8x32xf32>
    %c0_12 = arith.constant 0 : index
    %c0_13 = arith.constant 0 : index
    %34 = vector.load %arg15[%c0_12, %c0_13] : memref<8x64xf32, #tpu.memory_space<vmem>>, vector<8x32xf32>
    tpu.vector_store %arg15[%c0_12, %c0_13], %33 {strides = array<i32>} : memref<8x64xf32, #tpu.memory_space<vmem>>, vector<8x32xf32>,
    %35 = vector.extract_strided_slice %6 {offsets = [0, 32], sizes = [8, 32], strides = [1, 1]} : vector<8x192xf32> to vector<8x32xf32>
    %36 = vector.shape_cast %35 : vector<8x32xf32> to vector<1x8x32xf32>
    %37 = vector.extract_strided_slice %6 {offsets = [0, 96], sizes = [8, 32], strides = [1, 1]} : vector<8x192xf32> to vector<8x32xf32>
    %38 = vector.shape_cast %37 : vector<8x32xf32> to vector<1x8x32xf32>
    %39 = vector.extract_strided_slice %6 {offsets = [0, 160], sizes = [8, 32], strides = [1, 1]} : vector<8x192xf32> to vector<8x32xf32>
    %40 = vector.shape_cast %39 : vector<8x32xf32> to vector<1x8x32xf32>
    "tpu.trace_start"() <{level = 10 : i32, message = "bqd,bkd->bqk"}> : () -> ()
    %cst_14 = arith.constant dense<0.000000e+00> : vector<1x8x8xf32>
    %41 = tpu.matmul %36, %38, %cst_14 {dimension_numbers = #tpu.dot_dimension_numbers<[2], [2], [1], [1], [0, 0, 0, 1, 1, 1], [0], [0]>} : vector<1x8x32xf32>, vector<1x8x32xf32>, vector<1x8x8xf32> -> vector<1x8x8xf32>
    "tpu.trace_stop"() : () -> ()
    %42 = vector.shape_cast %12 : vector<8x8xf32> to vector<1x8x8xf32>
    %43 = arith.addf %41, %42 : vector<1x8x8xf32>
    %cst_15 = arith.constant dense<0xFF800000> : vector<1x8xf32>
    %44 = vector.multi_reduction <maximumf>, %43, %cst_15 [2] : vector<1x8x8xf32> to vector<1x8xf32>
    %45 = vector.shape_cast %44 : vector<1x8xf32> to vector<1x8x1xf32>
    %46 = vector.broadcast %45 : vector<1x8x1xf32> to vector<1x8x8xf32>
    %47 = arith.subf %43, %46 : vector<1x8x8xf32>
    %48 = math.exp %47 : vector<1x8x8xf32>
    %cst_16 = arith.constant dense<0.000000e+00> : vector<1x8xf32>
    %49 = vector.multi_reduction <add>, %48, %cst_16 [2] : vector<1x8x8xf32> to vector<1x8xf32>
    %50 = vector.shape_cast %49 : vector<1x8xf32> to vector<1x8x1xf32>
    %51 = tpu.reciprocal %50 : vector<1x8x1xf32> -> vector<1x8x1xf32>
    %52 = vector.broadcast %51 : vector<1x8x1xf32> to vector<1x8x8xf32>
    %53 = arith.mulf %48, %52 : vector<1x8x8xf32>
    "tpu.trace_start"() <{level = 10 : i32, message = "bqk,bkd->bqd"}> : () -> ()
    %cst_17 = arith.constant dense<0.000000e+00> : vector<1x8x32xf32>
    %54 = tpu.matmul %53, %40, %cst_17 {dimension_numbers = #tpu.dot_dimension_numbers<[2], [1], [1], [2], [0, 0, 0, 1, 1, 2], [0], [0]>} : vector<1x8x8xf32>, vector<1x8x32xf32>, vector<1x8x32xf32> -> vector<1x8x32xf32>
    "tpu.trace_stop"() : () -> ()
    %55 = vector.shape_cast %54 : vector<1x8x32xf32> to vector<8x32xf32>
    %c0_18 = arith.constant 0 : index
    %c32 = arith.constant 32 : index
    %56 = vector.load %arg15[%c0_18, %c32] : memref<8x64xf32, #tpu.memory_space<vmem>>, vector<8x32xf32>
    tpu.vector_store %arg15[%c0_18, %c32], %55 {strides = array<i32>} : memref<8x64xf32, #tpu.memory_space<vmem>>, vector<8x32xf32>,
    %c0_19 = arith.constant 0 : index
    %c0_20 = arith.constant 0 : index
    %57 = vector.load %arg15[%c0_19, %c0_20] : memref<8x64xf32, #tpu.memory_space<vmem>>, vector<8x64xf32>
    %c0_21 = arith.constant 0 : index
    %c0_22 = arith.constant 0 : index
    %58 = vector.load %arg4[%c0_21, %c0_22] : memref<64x64xf32, #tpu.memory_space<vmem>>, vector<64x64xf32>
    %cst_23 = arith.constant dense<0.000000e+00> : vector<8x64xf32>
    %59 = tpu.matmul %57, %58, %cst_23 {dimension_numbers = #tpu.dot_dimension_numbers<[1], [0], [0], [1], [0, 0, 1, 1], [], []>} : vector<8x64xf32>, vector<64x64xf32>, vector<8x64xf32> -> vector<8x64xf32>
    %c0_24 = arith.constant 0 : index
    %c0_25 = arith.constant 0 : index
    %60 = vector.load %arg5[%c0_24, %c0_25] : memref<1x64xf32, #tpu.memory_space<vmem>>, vector<1x64xf32>
    %61 = vector.broadcast %60 : vector<1x64xf32> to vector<8x64xf32>
    %62 = arith.addf %59, %61 : vector<8x64xf32>
    %63 = arith.addf %62, %1 : vector<8x64xf32>
    %c0_26 = arith.constant 0 : index
    %c0_27 = arith.constant 0 : index
    %64 = vector.load %arg6[%c0_26, %c0_27] : memref<1x64xf32, #tpu.memory_space<vmem>>, vector<1x64xf32>
    %c0_28 = arith.constant 0 : index
    %c0_29 = arith.constant 0 : index
    %65 = vector.load %arg7[%c0_28, %c0_29] : memref<1x64xf32, #tpu.memory_space<vmem>>, vector<1x64xf32>
    %cst_30 = arith.constant dense<0.000000e+00> : vector<8xf32>
    %66 = vector.multi_reduction <add>, %63, %cst_30 [1] : vector<8x64xf32> to vector<8xf32>
    %67 = vector.shape_cast %66 : vector<8xf32> to vector<8x1xf32>
    %cst_31 = arith.constant 6.400000e+01 : f32
    %68 = vector.broadcast %cst_31 : f32 to vector<8x1xf32>
    %69 = arith.divf %67, %68 : vector<8x1xf32>
    %70 = arith.mulf %63, %63 : vector<8x64xf32>
    %cst_32 = arith.constant dense<0.000000e+00> : vector<8xf32>
    %71 = vector.multi_reduction <add>, %70, %cst_32 [1] : vector<8x64xf32> to vector<8xf32>
    %72 = vector.shape_cast %71 : vector<8xf32> to vector<8x1xf32>
    %cst_33 = arith.constant 6.400000e+01 : f32
    %73 = vector.broadcast %cst_33 : f32 to vector<8x1xf32>
    %74 = arith.divf %72, %73 : vector<8x1xf32>
    %75 = arith.mulf %69, %69 : vector<8x1xf32>
    %76 = arith.subf %74, %75 : vector<8x1xf32>
    %77 = vector.broadcast %69 : vector<8x1xf32> to vector<8x64xf32>
    %78 = arith.subf %63, %77 : vector<8x64xf32>
    %cst_34 = arith.constant 9.99999974E-6 : f32
    %79 = vector.broadcast %cst_34 : f32 to vector<8x1xf32>
    %80 = arith.addf %76, %79 : vector<8x1xf32>
    %81 = math.rsqrt %80 : vector<8x1xf32>
    %82 = vector.broadcast %81 : vector<8x1xf32> to vector<8x64xf32>
    %83 = arith.mulf %78, %82 : vector<8x64xf32>
    %84 = vector.broadcast %64 : vector<1x64xf32> to vector<8x64xf32>
    %85 = arith.mulf %83, %84 : vector<8x64xf32>
    %86 = vector.broadcast %65 : vector<1x64xf32> to vector<8x64xf32>
    %87 = arith.addf %85, %86 : vector<8x64xf32>
    %c0_35 = arith.constant 0 : index
    %c0_36 = arith.constant 0 : index
    %88 = vector.load %arg8[%c0_35, %c0_36] : memref<64x256xf32, #tpu.memory_space<vmem>>, vector<64x256xf32>
    %cst_37 = arith.constant dense<0.000000e+00> : vector<8x256xf32>
    %89 = tpu.matmul %87, %88, %cst_37 {dimension_numbers = #tpu.dot_dimension_numbers<[1], [0], [0], [1], [0, 0, 1, 1], [], []>} : vector<8x64xf32>, vector<64x256xf32>, vector<8x256xf32> -> vector<8x256xf32>
    %c0_38 = arith.constant 0 : index
    %c0_39 = arith.constant 0 : index
    %90 = vector.load %arg9[%c0_38, %c0_39] : memref<1x256xf32, #tpu.memory_space<vmem>>, vector<1x256xf32>
    %91 = vector.broadcast %90 : vector<1x256xf32> to vector<8x256xf32>
    %92 = arith.addf %89, %91 : vector<8x256xf32>
    %cst_40 = arith.constant 5.000000e-01 : f32
    %93 = vector.broadcast %cst_40 : f32 to vector<8x256xf32>
    %94 = arith.mulf %93, %92 : vector<8x256xf32>
    %cst_41 = arith.constant 2.000000e+00 : f32
    %95 = math.sqrt %cst_41 : f32
    %96 = vector.broadcast %95 : f32 to vector<8x256xf32>
    %97 = arith.divf %92, %96 : vector<8x256xf32>
    %98 = math.erf %97 : vector<8x256xf32>
    %cst_42 = arith.constant 1.000000e+00 : f32
    %99 = vector.broadcast %cst_42 : f32 to vector<8x256xf32>
    %100 = arith.addf %99, %98 : vector<8x256xf32>
    %101 = arith.mulf %94, %100 : vector<8x256xf32>
    %c0_43 = arith.constant 0 : index
    %c0_44 = arith.constant 0 : index
    %102 = vector.load %arg10[%c0_43, %c0_44] : memref<256x64xf32, #tpu.memory_space<vmem>>, vector<256x64xf32>
    %cst_45 = arith.constant dense<0.000000e+00> : vector<8x64xf32>
    %103 = tpu.matmul %101, %102, %cst_45 {dimension_numbers = #tpu.dot_dimension_numbers<[1], [0], [0], [1], [0, 0, 1, 1], [], []>} : vector<8x256xf32>, vector<256x64xf32>, vector<8x64xf32> -> vector<8x64xf32>
    %c0_46 = arith.constant 0 : index
    %c0_47 = arith.constant 0 : index
    %104 = vector.load %arg11[%c0_46, %c0_47] : memref<1x64xf32, #tpu.memory_space<vmem>>, vector<1x64xf32>
    %105 = vector.broadcast %104 : vector<1x64xf32> to vector<8x64xf32>
    %106 = arith.addf %103, %105 : vector<8x64xf32>
    %107 = arith.addf %106, %87 : vector<8x64xf32>
    %c0_48 = arith.constant 0 : index
    %c0_49 = arith.constant 0 : index
    %108 = vector.load %arg12[%c0_48, %c0_49] : memref<1x64xf32, #tpu.memory_space<vmem>>, vector<1x64xf32>
    %c0_50 = arith.constant 0 : index
    %c0_51 = arith.constant 0 : index
    %109 = vector.load %arg13[%c0_50, %c0_51] : memref<1x64xf32, #tpu.memory_space<vmem>>, vector<1x64xf32>
    %cst_52 = arith.constant dense<0.000000e+00> : vector<8xf32>
    %110 = vector.multi_reduction <add>, %107, %cst_52 [1] : vector<8x64xf32> to vector<8xf32>
    %111 = vector.shape_cast %110 : vector<8xf32> to vector<8x1xf32>
    %cst_53 = arith.constant 6.400000e+01 : f32
    %112 = vector.broadcast %cst_53 : f32 to vector<8x1xf32>
    %113 = arith.divf %111, %112 : vector<8x1xf32>
    %114 = arith.mulf %107, %107 : vector<8x64xf32>
    %cst_54 = arith.constant dense<0.000000e+00> : vector<8xf32>
    %115 = vector.multi_reduction <add>, %114, %cst_54 [1] : vector<8x64xf32> to vector<8xf32>
    %116 = vector.shape_cast %115 : vector<8xf32> to vector<8x1xf32>
    %cst_55 = arith.constant 6.400000e+01 : f32
    %117 = vector.broadcast %cst_55 : f32 to vector<8x1xf32>
    %118 = arith.divf %116, %117 : vector<8x1xf32>
    %119 = arith.mulf %113, %113 : vector<8x1xf32>
    %120 = arith.subf %118, %119 : vector<8x1xf32>
    %121 = vector.broadcast %113 : vector<8x1xf32> to vector<8x64xf32>
    %122 = arith.subf %107, %121 : vector<8x64xf32>
    %cst_56 = arith.constant 9.99999974E-6 : f32
    %123 = vector.broadcast %cst_56 : f32 to vector<8x1xf32>
    %124 = arith.addf %120, %123 : vector<8x1xf32>
    %125 = math.rsqrt %124 : vector<8x1xf32>
    %126 = vector.broadcast %125 : vector<8x1xf32> to vector<8x64xf32>
    %127 = arith.mulf %122, %126 : vector<8x64xf32>
    %128 = vector.broadcast %108 : vector<1x64xf32> to vector<8x64xf32>
    %129 = arith.mulf %127, %128 : vector<8x64xf32>
    %130 = vector.broadcast %109 : vector<1x64xf32> to vector<8x64xf32>
    %131 = arith.addf %129, %130 : vector<8x64xf32>
    %132 = vector.shape_cast %131 : vector<8x64xf32> to vector<1x8x64xf32>
    %c0_57 = arith.constant 0 : index
    %c0_58 = arith.constant 0 : index
    %c0_59 = arith.constant 0 : index
    %133 = vector.load %arg14[%c0_57, %c0_58, %c0_59] : memref<1x8x64xf32, #tpu.memory_space<vmem>>, vector<1x8x64xf32>
    tpu.vector_store %arg14[%c0_57, %c0_58, %c0_59], %132 {strides = array<i32>} : memref<1x8x64xf32, #tpu.memory_space<vmem>>, vector<1x8x64xf32>,
    return
  }
  func.func @transform_0(%arg0: i32) -> (i32, i32, i32) {
    %c0_i32 = arith.constant 0 : i32
    %c0_i32_0 = arith.constant 0 : i32
    %c0_i32_1 = arith.constant 0 : i32
    return %arg0, %c0_i32, %c0_i32_0 : i32, i32, i32
  }
  func.func @transform_1(%arg0: i32) -> (i32, i32) {
    %c0_i32 = arith.constant 0 : i32
    %c0_i32_0 = arith.constant 0 : i32
    %c0_i32_1 = arith.constant 0 : i32
    return %c0_i32, %c0_i32_0 : i32, i32
  }
  func.func @transform_2(%arg0: i32) -> (i32, i32) {
    %c0_i32 = arith.constant 0 : i32
    %c0_i32_0 = arith.constant 0 : i32
    %c0_i32_1 = arith.constant 0 : i32
    return %c0_i32, %c0_i32_0 : i32, i32
  }
  func.func @transform_3(%arg0: i32) -> (i32, i32) {
    %c0_i32 = arith.constant 0 : i32
    %c0_i32_0 = arith.constant 0 : i32
    %c0_i32_1 = arith.constant 0 : i32
    return %c0_i32, %c0_i32_0 : i32, i32
  }
  func.func @transform_4(%arg0: i32) -> (i32, i32) {
    %c0_i32 = arith.constant 0 : i32
    %c0_i32_0 = arith.constant 0 : i32
    %c0_i32_1 = arith.constant 0 : i32
    return %c0_i32, %c0_i32_0 : i32, i32
  }
  func.func @transform_5(%arg0: i32) -> (i32, i32) {
    %c0_i32 = arith.constant 0 : i32
    %c0_i32_0 = arith.constant 0 : i32
    %c0_i32_1 = arith.constant 0 : i32
    return %c0_i32, %c0_i32_0 : i32, i32
  }
  func.func @transform_6(%arg0: i32) -> (i32, i32) {
    %c0_i32 = arith.constant 0 : i32
    %c0_i32_0 = arith.constant 0 : i32
    %c0_i32_1 = arith.constant 0 : i32
    return %c0_i32, %c0_i32_0 : i32, i32
  }
  func.func @transform_7(%arg0: i32) -> (i32, i32) {
    %c0_i32 = arith.constant 0 : i32
    %c0_i32_0 = arith.constant 0 : i32
    %c0_i32_1 = arith.constant 0 : i32
    return %c0_i32, %c0_i32_0 : i32, i32
  }
  func.func @transform_8(%arg0: i32) -> (i32, i32) {
    %c0_i32 = arith.constant 0 : i32
    %c0_i32_0 = arith.constant 0 : i32
    %c0_i32_1 = arith.constant 0 : i32
    return %c0_i32, %c0_i32_0 : i32, i32
  }
  func.func @transform_9(%arg0: i32) -> (i32, i32) {
    %c0_i32 = arith.constant 0 : i32
    %c0_i32_0 = arith.constant 0 : i32
    %c0_i32_1 = arith.constant 0 : i32
    return %c0_i32, %c0_i32_0 : i32, i32
  }
  func.func @transform_10(%arg0: i32) -> (i32, i32) {
    %c0_i32 = arith.constant 0 : i32
    %c0_i32_0 = arith.constant 0 : i32
    %c0_i32_1 = arith.constant 0 : i32
    return %c0_i32, %c0_i32_0 : i32, i32
  }
  func.func @transform_11(%arg0: i32) -> (i32, i32) {
    %c0_i32 = arith.constant 0 : i32
    %c0_i32_0 = arith.constant 0 : i32
    %c0_i32_1 = arith.constant 0 : i32
    return %c0_i32, %c0_i32_0 : i32, i32
  }
  func.func @transform_12(%arg0: i32) -> (i32, i32) {
    %c0_i32 = arith.constant 0 : i32
    %c0_i32_0 = arith.constant 0 : i32
    %c0_i32_1 = arith.constant 0 : i32
    return %c0_i32, %c0_i32_0 : i32, i32
  }
  func.func @transform_13(%arg0: i32) -> (i32, i32, i32) {
    %c0_i32 = arith.constant 0 : i32
    %c0_i32_0 = arith.constant 0 : i32
    %c0_i32_1 = arith.constant 0 : i32
    return %arg0, %c0_i32, %c0_i32_0 : i32, i32, i32
  }
}

</mosaic_0001>

<bundles_post_ra>
// kernel: tpu_custom_call.1
= control target key start
LH: loop header
LB: loop body
LE: loop exit
PB: predicated region body
PF: predicated region fallthrough
CT: control target
= control target key end

     0   :  { %s2131_s0 = inlined_call_operand.vmem [shape: f32[2,8,64], index: 0, kind: input, shape index: {}]   ;;  %s2132_s1 = inlined_call_operand.vmem [shape: f32[64,192], index: 1, kind: input, shape index: {}]   ;;  %s2133_s2 = inlined_call_operand.vmem [shape: f32[1,192], index: 2, kind: input, shape index: {}]   ;;  %s2134_s3 = inlined_call_operand.vmem [shape: f32[64,64], index: 3, kind: input, shape index: {}]   ;;  %s2135_s4 = inlined_call_operand.vmem [shape: f32[1,64], index: 4, kind: input, shape index: {}]   ;;  %s2136_s5 = inlined_call_operand.vmem [shape: f32[1,64], index: 5, kind: input, shape index: {}]   ;;  %s2137_s6 = inlined_call_operand.vmem [shape: f32[1,64], index: 6, kind: input, shape index: {}]   ;;  %s2138_s7 = inlined_call_operand.vmem [shape: f32[64,256], index: 7, kind: input, shape index: {}]   ;;  %s2139_s8 = inlined_call_operand.vmem [shape: f32[1,256], index: 8, kind: input, shape index: {}]   ;;  %s2140_s9 = inlined_call_operand.vmem [shape: f32[256,64], index: 9, kind: input, shape index: {}]   ;;  %s2141_s10 = inlined_call_operand.vmem [shape: f32[1,64], index: 10, kind: input, shape index: {}]   ;;  %s2142_s11 = inlined_call_operand.vmem [shape: f32[1,64], index: 11, kind: input, shape index: {}]   ;;  %s2143_s12 = inlined_call_operand.vmem [shape: f32[1,64], index: 12, kind: input, shape index: {}]   ;;  %s2144_s13 = inlined_call_operand.hbm [shape: f32[2,8,64], index: 13, kind: output, shape index: {}]  }
   0x1   :  { %2146 = sst [smem:[#allocation8_spill]] %s2131_s0 }
   0x2   :  { %2147 = sst [smem:[#allocation9_spill]] %s2132_s1 }
   0x3   :  { %18 = vsyncpa [#allocation4], 0 }
   0x4   :  { %20 = vsyncpa [#allocation4 + $0x1], 0  ;;  %s1726_s25 = smov 0   ;;  %s1728_s26 = smov 0  }
   0x5   :  { %s1730_s27 = smov 0   ;;  %s1732_s28 = smov 0  }
   0x6 LB: > { %2148 = sst [smem:[#allocation6_spill]] %s1643_s27  ;;  %s1747_s29 = sadd.s32 4294967295, %s1647_s28   ;;  %s1647_s28 = sphi %s1732_s28, %s2158_s28   ;;  %s1643_s27 = sphi %s1730_s27, %s2155_s27   ;;  %s1639_s26 = sphi %s1728_s26, %s2157_s26   ;;  %s1635_s25 = sphi %s1726_s25, %s2156_s25  }
   0x7   : > { %s1332_s30 = sadd.s32 4294967294, %s1647_s28   ;;  %s1751_s14 = sadd.s32 1, %s1647_s28  }
   0x8   : > { %s311_s15 = sadd.s32 1, %s1643_s27  ;;  %s308_s16 = ssub.s32 %s1647_s28, %s1751_s14 }
   0x9   : > { %p321_p0 = scmp.ne.s32.totalorder %s1643_s27, %s1639_s26  ;;  %p309_p1 = scmp.eq.s32.totalorder %s308_s16, 0 }
   0xa   : > { %p322_p2 = scmp.eq.s32.totalorder %s1747_s29, 1  ;;  %p327_p3 = scmp.ne.s32.totalorder %s1639_s26, %s1635_s25 }
   0xb   : > { %p328_p4 = scmp.eq.s32.totalorder %s1332_s30, 1  ;;  %p1335_p7 = scmp.ge.s32.totalorder %s1647_s28, 1 }
   0xc   : > { %s1762_s17 = scalar_select %p309_p1, %s1643_s27, %s311_s15  }
   0xd   : > { %p1764_p5 = por %p322_p2, %p321_p0  ;;  %p1768_p6 = por %p328_p4, %p327_p3 }
   0xe   : > { %2149 = sst [smem:[#allocation7_spill]] %s1762_s17  ;;  %p389_p8 = scmp.lt.s32.totalorder %s1647_s28, 3 }
  0x10   : > { %p390_p9 = pnand %p1335_p7, %p389_p8 }
  0x11   : > { %s2152_s1 = sld [smem:[#allocation9_spill]] (!%p390_p9)  ;;  %v1649_v7 = vmov (!%p390_p9), 0.0   ;;  %p432_p10 = scmp.lt.s32.totalorder (!%p390_p9), %s1747_s29, 1  ;;  %vm465_vm0 = vcmask (!%p390_p9), 523264   ;;  %v455_v26 = vlaneseq (!%p390_p9)  ;;  %vm1650_vm1 = vmmov (!%p390_p9), 0  }
  0x12   : > { %393 = sbr.rel (%p390_p9) target bundleno = 2789 (0xae5), region = 72  ;;  %533 = vmatprep.mubr.f32.mxu1 (!%p390_p9), %v1649_v7  ;;  %s2153_s0 = sld [smem:[#allocation8_spill]] (!%p390_p9)  ;;  %1445 = vmatprep.mubr.msk.f32.mxu0 (!%p390_p9), %vm1650_vm1, %v1649_v7  ;;  %v453_v29 = vld [vmem:[%s2133_s2] sm:$0x3] (!%p390_p9)  ;;  %vm549_vm2 = vcmask (!%p390_p9), 261120   ;;  %vm624_vm4 = vcmask (!%p390_p9), 64512  }
  0x13   : > { %v1833_v27 = vshrl.u32 (!%p390_p9), %v455_v26, 7  ;;  %s1651_s16 = smov (!%p390_p9), 32   ;;  %s1652_s20 = smov (!%p390_p9), 64   ;;  %v543_v38 = vand.u32 (!%p390_p9), 127, %v455_v26  ;;  %vm880_vm5 = vcmask (!%p390_p9), 523520  }
  0x14   : > { %s1653_s21 = smov (!%p390_p9), 96   ;;  %s1354_s24 = sshll.u32 (!%p390_p9), %s1747_s29, 7 }
  0x15   : > { %v457_v28 = vsub.s32 (!%p390_p9), 0, %v1833_v27  ;;  %v461_v34 = vsub.s32 (!%p390_p9), 1, %v1833_v27  ;;  %vm544_vm3 = vcmp.le.s32.totalorder (!%p390_p9), %v543_v38, %v1833_v27 }
  0x16   : > { %v545_v39 = vsel (!%p390_p9), %vm544_vm3, 1.0, %v1649_v7 }
  0x17   : > { %v438_v0 = vld [vmem:[%s2152_s1 + $0x8] sm:$0xff] (!%p390_p9)  ;;  %v440_v1 = vld [vmem:[%s2152_s1 + $0x18] sm:$0xff] (!%p390_p9)  ;;  %v437_v2 = vld [vmem:[%s2152_s1] sm:$0xff] (!%p390_p9)  ;;  %v458_v30 = vrot.slane (!%p390_p9), %v453_v29, %v457_v28  ;;  %v462_v35 = vrot.slane (!%p390_p9), %v453_v29, %v461_v34 }
  0x18   : > { %v1448_v3 = vpack.c.bf16 (!%p390_p9), %v440_v1, %v438_v0  ;;  %v439_v4 = vld [vmem:[%s2152_s1 + $0x10] sm:$0xff] (!%p390_p9)  ;;  %v442_v5 = vld [vmem:[%s2152_s1 + $0x28] sm:$0xff] (!%p390_p9)  ;;  %v444_v6 = vld [vmem:[%s2152_s1 + $0x38] sm:$0xff] (!%p390_p9) }
  0x19   : > { %v1450_v8 = vpack.c.bf16 %v439_v4, %v437_v2  ;;  %v1452_v9 = vpack.c.bf16 %v444_v6, %v442_v5  ;;  %v441_v10 = vld [vmem:[%s2152_s1 + $0x20] sm:$0xff]  ;;  %v443_v11 = vld [vmem:[%s2152_s1 + $0x30] sm:$0xff]  ;;  %v446_v12 = vld [vmem:[%s2152_s1 + $0x48] sm:$0xff]  ;;  %s433_s15 = scalar_select %p432_p10, %s1747_s29, 1 }
  0x1a   : > { %1449 = vmatprep.subr.bf16.mxu1 %v1448_v3  ;;  %v448_v13 = vld [vmem:[%s2152_s1 + $0x58] sm:$0xff]  ;;  %v1454_v14 = vpack.c.bf16 %v443_v11, %v441_v10  ;;  %v445_v16 = vld [vmem:[%s2152_s1 + $0x40] sm:$0xff]  ;;  %v447_v17 = vld [vmem:[%s2152_s1 + $0x50] sm:$0xff]  ;;  %s1655_s29 = smov [#allocation3]  }
  0x1b   : > { %1451 = vmatpush1.bf16.msra.mxu1 %v1450_v8  ;;  %v1456_v15 = vpack.c.bf16 %v448_v13, %v446_v12  ;;  %v450_v18 = vld [vmem:[%s2152_s1 + $0x68] sm:$0xff]  ;;  %v452_v19 = vld [vmem:[%s2152_s1 + $0x78] sm:$0xff]  ;;  %v1458_v20 = vpack.c.bf16 %v447_v17, %v445_v16  ;;  %v449_v22 = vld [vmem:[%s2152_s1 + $0x60] sm:$0xff]  ;;  %s1337_s23 = sshll.u32 %s433_s15, 3 }
  0x1c   : > { %1453 = vmatprep.subr.bf16.mxu1 %v1452_v9  ;;  %v1460_v21 = vpack.c.bf16 %v452_v19, %v450_v18  ;;  %v451_v23 = vld [vmem:[%s2152_s1 + $0x70] sm:$0xff]  ;;  %s435_s27 = scalar_lea.vmem %s2153_s0, %s1337_s23  ;;  %v883_v5 = vld [vmem:[%s2134_s3] sm:$0xff]  ;;  %v884_v6 = vld [vmem:[%s2134_s3 + $0x8] sm:$0xff]  ;;  %v1654_v9 = vmov 0.0|0.0   ;;  %s2088_s1 = scalar_lea.hbm %s2144_s13, %s1354_s24 }
  0x1d   : > { %v1462_v24 = vpack.c.bf16 %v451_v23, %v449_v22  ;;  %v1828_v25 = vld [vmem:[%s435_s27] sm:$0xff]  ;;  %v885_v8 = vld [vmem:[%s2134_s3 + $0x10] sm:$0xff]  ;;  %1464 = vmatprep.subr.bf16.mxu0 %v1654_v9  ;;  %v1465_v10 = vpack.c.bf16 %v884_v6, %v883_v5  ;;  %v886_v11 = vld [vmem:[%s2134_s3 + $0x18] sm:$0xff] }
  0x1e   : > { %v887_v12 = vld [vmem:[%s2134_s3 + $0x20] sm:$0xff]  ;;  %v888_v13 = vld [vmem:[%s2134_s3 + $0x28] sm:$0xff]  ;;  %v890_v16 = vld [vmem:[%s2134_s3 + $0x38] sm:$0xff] }
  0x1f   : > { %1455 = vmatpush1.bf16.msra.mxu1 %v1454_v14  ;;  %1466 = vmatpush3.bf16.msra.mxu0 %v1465_v10  ;;  %v1471_v14 = vpack.c.bf16 %v888_v13, %v887_v12  ;;  %v1345_v22 = vld [vmem:[%s2135_s4] ss:$0 sm:$0xff]  ;;  %v1138_v5 = vld [vmem:[%s2140_s9 + $0xa8] sm:$0xff] }
  0x20   : > { %1457 = vmatprep.subr.bf16.mxu1 %v1456_v15  ;;  %1467 = vmatprep.subr.bf16.mxu0 %v1654_v9  ;;  %v889_v15 = vld [vmem:[%s2134_s3 + $0x30] sm:$0xff]  ;;  %v1122_v10 = vld [vmem:[%s2140_s9 + $0x28] sm:$0xff] }
  0x21   : > { %v1474_v17 = vpack.c.bf16 %v890_v16, %v889_v15 }
  0x23   : > { %1459 = vmatpush1.bf16.msra.mxu1 %v1458_v20 }
  0x24   : > { %1461 = vmatprep.subr.bf16.mxu1 %v1460_v21 }
  0x27   : > { %1463 = vmatpush1.bf16.msra.mxu1 %v1462_v24 }
  0x28   : > { %1409 = vmatprep.subr.mxu1 %v1649_v7 }
  0x2a   : > { %1338 = vmatmul.mubr.msk.f32.vlgmr.msra.gmra.mrb[0].mxu1 %vm465_vm0, %v1828_v25 }
  0x2b   : > { %1411 = vmatprep.mubr.msk.f32.mxu1 %vm1650_vm1, %v1649_v7 }
  0xfd   : > { %v535_v31 = vpop.f32.mrb[0].mxu1 }
  0xfe   : > { %v536_v32 = vadd.f32 %v535_v31, %v458_v30  ;;  %v537_v33 = vpop.f32.mrb[1].mxu1 }
  0xff   : > { %v538_v37 = vadd.f32 %v537_v33, %v462_v35  ;;  %v1005_v33 = vld [vmem:[%s2138_s7 + $0x8] sm:$0xff]  ;;  %v1007_v35 = vld [vmem:[%s2138_s7 + $0x18] sm:$0xff] }
 0x100   : > { %712 = vrot.lane.b32.xlu1 %v536_v32, %s1651_s16  ;;  %547 = vrot.lane.b32.xlu0 %v536_v32, %s1652_s20  ;;  %s429_s20 = sand.u32 1, %s1639_s26  }
 0x172   : > { %v548_v36 = vpop.permute.xlu0 %547  ;;  %v713_v49 = vpop.permute.xlu1 %712 }
 0x173   : > { %1410 = vmatpush3.xpose.msk.msra.mxu1 %vm549_vm2, %v548_v36  ;;  %v1004_v36 = vld [vmem:[%s2138_s7] sm:$0xff] }
 0x174   : > { %1414 = vmatprep.subr.mxu1 %v1649_v7 }
 0x176   : > { %1412 = vmatmul.mubr.msk.f32.vlgmr.msra.gmra.mrb[2].mxu1 %vm549_vm2, %v536_v32 }
 0x177   : > { %1415 = vmatpush3.msra.mxu1 %v538_v37  ;;  %1416 = vmatprep.mubr.msk.f32.mxu1 %vm1650_vm1, %v1649_v7 }
 0x178   : > { %1419 = vmatprep.subr.mxu1 %v1649_v7 }
 0x249   : > { %v620_v40 = vpop.f32.mrb[2].mxu1 }
 0x24a   : > { %v621_v41 = vadd.f32 %v620_v40, %v545_v39  ;;  %v1413_v42 = vpop.f32.mrb[3].mxu1  ;;  %v1011_v40 = vld [vmem:[%s2138_s7 + $0x38] sm:$0xff] }
 0x24b   : > { %v1008_v42 = vld [vmem:[%s2138_s7 + $0x20] sm:$0xff] }
 0x24c   : > { %v625_v43 = vsel %vm624_vm4, %v621_v41, -inf }
 0x24d   : > { %626 = vmax.xlane.f32.xlu0 %v625_v43  ;;  %v1010_v43 = vld [vmem:[%s2138_s7 + $0x30] sm:$0xff] }
 0x2da   : > { %v627_v44 = vpop.xlane.xlu0 %626 }
 0x2db   : > { %v628_v45 = vsub.f32 %v621_v41, %v627_v44  ;;  %v1482_v44 = vpack.c.bf16 %v1010_v43, %v1008_v42  ;;  %v1127_v43 = vld [vmem:[%s2140_s9 + $0x50] sm:$0xff] }
 0x2dd   : > { %v629_v46 = vmul.f32 1.442695, %v628_v45  ;;  %v1013_v45 = vld [vmem:[%s2138_s7 + $0x48] sm:$0xff] }
 0x2df   : > { %1569 = vpow2.f32 %v629_v46  ;;  %v1015_v46 = vld [vmem:[%s2138_s7 + $0x58] sm:$0xff] }
 0x2e9   : > { %v1570_v47 = vpop.eup %1569 }
 0x2ea   : > { %v631_v48 = vsel %vm624_vm4, %v1570_v47, 0.0 }
 0x2eb   : > { %632 = vadd.xlane.f32.xlu1 %v631_v48  ;;  %v1012_v48 = vld [vmem:[%s2138_s7 + $0x40] sm:$0xff] }
 0x2fc   : > { %710 = vrot.lane.b32.xlu1 %v536_v32, %s1653_s21 }
 0x378   : > { %v633_v50 = vpop.xlane.xlu1 %632 }
 0x379   : > { %1571 = vrcp.f32 %v633_v50 }
 0x37c   : > { %v711_v53 = vpop.permute.xlu1 %710 }
 0x383   : > { %v1572_v51 = vpop.eup %1571 }
 0x384   : > { %v635_v52 = vmul.f32 %v1572_v51, %v1570_v47  ;;  %v1484_v47 = vpack.c.bf16 %v1015_v46, %v1013_v45  ;;  %v1017_v51 = vld [vmem:[%s2138_s7 + $0x68] sm:$0xff]  ;;  %v1145_v46 = vld [vmem:[%s2140_s9 + $0xe0] sm:$0xff] }
 0x386   : > { %1417 = vmatmul.mubr.msk.f32.vlgmr.msra.gmra.mrb[4].mxu1 %vm624_vm4, %v635_v52  ;;  %v1019_v52 = vld [vmem:[%s2138_s7 + $0x78] sm:$0xff] }
 0x387   : > { %1420 = vmatpush3.xpose.msk.msra.mxu1 %vm549_vm2, %v713_v49  ;;  %1421 = vmatprep.mubr.msk.f32.mxu1 %vm1650_vm1, %v1649_v7  ;;  %v1014_v49 = vld [vmem:[%s2138_s7 + $0x50] sm:$0xff] }
 0x388   : > { %1424 = vmatprep.subr.mxu1 %v1649_v7  ;;  %v1486_v50 = vpack.c.bf16 %v1014_v49, %v1012_v48  ;;  %v1129_v49 = vld [vmem:[%s2140_s9 + $0x60] sm:$0xff] }
 0x38a   : > { %1422 = vmatmul.mubr.msk.f32.vlgmr.msra.gmra.mrb[6].mxu1 %vm549_vm2, %v711_v53  ;;  %v1016_v53 = vld [vmem:[%s2138_s7 + $0x60] sm:$0xff] }
 0x38b   : > { %1426 = vmatprep.mubr.msk.f32.mxu1 %vm1650_vm1, %v1649_v7 }
 0x459   : > { %v705_v54 = vpop.f32.mrb[4].mxu1 }
 0x45a   : > { %709 = vst.msk [vmem:[#allocation2] sm:$0xff] %vm549_vm2, %v705_v54  ;;  %v1418_v55 = vpop.f32.mrb[5].mxu1  ;;  %v1488_v54 = vpack.c.bf16 %v1019_v52, %v1017_v51  ;;  %v1147_v52 = vld [vmem:[%s2140_s9 + $0xf0] sm:$0xff] }
 0x45b   : > { %v1018_v55 = vld [vmem:[%s2138_s7 + $0x70] sm:$0xff] }
 0x45d   : > { %v784_v56 = vpop.f32.mrb[6].mxu1 }
 0x45e   : > { %v785_v57 = vadd.f32 %v784_v56, %v545_v39  ;;  %v1423_v58 = vpop.f32.mrb[7].mxu1  ;;  %v1009_v39 = vld [vmem:[%s2138_s7 + $0x28] sm:$0xff]  ;;  %v1490_v56 = vpack.c.bf16 %v1018_v55, %v1016_v53  ;;  %v1148_v53 = vld [vmem:[%s2140_s9 + $0xf8] sm:$0xff]  ;;  %v1131_v55 = vld [vmem:[%s2140_s9 + $0x70] sm:$0xff] }
 0x45f   : > { %v1480_v41 = vpack.c.bf16 %v1011_v40, %v1009_v39  ;;  %v1134_v58 = vld [vmem:[%s2140_s9 + $0x88] sm:$0xff]  ;;  %v1143_v40 = vld [vmem:[%s2140_s9 + $0xd0] sm:$0xff] }
 0x460   : > { %v788_v59 = vsel %vm624_vm4, %v785_v57, -inf }
 0x461   : > { %789 = vmax.xlane.f32.xlu1 %v788_v59  ;;  %v1117_v59 = vld [vmem:[%s2140_s9] sm:$0xff] }
 0x4ee   : > { %v790_v60 = vpop.xlane.xlu1 %789 }
 0x4ef   : > { %v791_v61 = vsub.f32 %v785_v57, %v790_v60  ;;  %v1133_v57 = vld [vmem:[%s2140_s9 + $0x80] sm:$0xff] }
 0x4f0   : > { %v1492_v60 = vpack.c.bf16 %v1134_v58, %v1133_v57  ;;  %v1020_v58 = vld [vmem:[%s2139_s8] sm:$0x3] }
 0x4f1   : > { %v792_v62 = vmul.f32 1.442695, %v791_v61  ;;  %v1118_v61 = vld [vmem:[%s2140_s9 + $0x8] sm:$0xff] }
 0x4f3   : > { %1573 = vpow2.f32 %v792_v62  ;;  %v1135_v62 = vld [vmem:[%s2140_s9 + $0x90] sm:$0xff] }
 0x4fd   : > { %v1574_v63 = vpop.eup %1573 }
 0x4fe   : > { %v794_v0 = vsel %vm624_vm4, %v1574_v63, 0.0 }
 0x4ff   : > { %795 = vadd.xlane.f32.xlu0 %v794_v0  ;;  %v1494_v0 = vpack.c.bf16 %v1118_v61, %v1117_v59  ;;  %v1025_v59 = vrot.slane %v1020_v58, %v457_v28  ;;  %v1350_v28 = vld [vmem:[%s2141_s10] ss:$0 sm:$0xff] }
 0x515   : > { %800 = vrot.lane.b32.xlu0 %v538_v37, %s1653_s21  ;;  %v1006_v37 = vld [vmem:[%s2138_s7 + $0x10] sm:$0xff]  ;;  %s1336_s21 = sshll.u32 %s429_s20, 3 }
 0x516   : > { %v1478_v38 = vpack.c.bf16 %v1006_v37, %v1004_v36  ;;  %v1125_v37 = vld [vmem:[%s2140_s9 + $0x40] sm:$0xff]  ;;  %s431_s30 = scalar_lea.vmem [#allocation3], %s1336_s21  ;;  %s1589_s21 = sshll.u32 %s1655_s29, 4  ;;  %s1590_s21 = int_to_ptr.vmem [resolvable:$false] %s1589_s21 }
 0x517   : > { %s1273_s27 = sshll.u32 %s431_s30, 4  ;;  %s1591_s22 = scalar_lea.vmem %s1590_s21, 256  ;;  %s2090_s27 = int_to_ptr.vmem [resolvable:$true] %s1273_s27 }
 0x518   : > { %s1585_s0 = scalar_lea.vmem %s2090_s27, 128  ;;  %p1592_p0 = scmp.lt.s32.totalorder %s2090_s27, %s1590_s21 }
 0x519   : > { %p1586_p11 = scmp.ne.s32.totalorder %s2090_s27, %s1585_s0  ;;  %p1593_p1 = scmp.lt.s32.totalorder %s1591_s22, %s1585_s0 }
 0x51b   : > { %p1587_p12 = pnand %p1586_p11, %p1764_p5  ;;  %p1594_p2 = por %p1593_p1, %p1592_p0 }
 0x51d   : > { %p1588_p13 = pneg %p1587_p12 }
 0x51f   : > { %p1595_p3 = pnand %p1594_p2, %p1588_p13 }
 0x58c   : > { %v796_v1 = vpop.xlane.xlu0 %795 }
 0x58d   : > { %1575 = vrcp.f32 %v796_v1 }
 0x590   : > { %v801_v2 = vpop.permute.xlu0 %800 }
 0x591   : > { %1425 = vmatpush3.msra.mxu1 %v801_v2  ;;  %v1119_v2 = vld [vmem:[%s2140_s9 + $0x10] sm:$0xff] }
 0x597   : > { %v1576_v3 = vpop.eup %1575 }
 0x598   : > { %v798_v4 = vmul.f32 %v1576_v3, %v1574_v63  ;;  %v1136_v63 = vld [vmem:[%s2140_s9 + $0x98] sm:$0xff] }
 0x599   : > { %v1496_v1 = vpack.c.bf16 %v1136_v63, %v1135_v62  ;;  %v1120_v3 = vld [vmem:[%s2140_s9 + $0x18] sm:$0xff] }
 0x59a   : > { %1427 = vmatmul.mubr.msk.f32.vlgmr.msra.gmra.mrb[8].mxu1 %vm624_vm4, %v798_v4  ;;  %v1137_v4 = vld [vmem:[%s2140_s9 + $0xa0] sm:$0xff]  ;;  %v1498_v6 = vpack.c.bf16 %v1120_v3, %v1119_v2 }
 0x59b   : > { %1099 = vmatprep.mubr.f32.mxu1 %v1649_v7  ;;  %v1468_v7 = vpack.c.bf16 %v886_v11, %v885_v8  ;;  %v1500_v8 = vpack.c.bf16 %v1138_v5, %v1137_v4 }
 0x59d   : > { %1469 = vmatpush3.bf16.msra.mxu0 %v1468_v7 }
 0x59e   : > { %1470 = vmatprep.subr.bf16.mxu0 %v1654_v9 }
 0x5a1   : > { %1472 = vmatpush3.bf16.msra.mxu0 %v1471_v14 }
 0x5a2   : > { %1473 = vmatprep.subr.bf16.mxu0 %v1654_v9  ;;  %v1121_v9 = vld [vmem:[%s2140_s9 + $0x20] sm:$0xff] }
 0x5a3   : > { %v1502_v11 = vpack.c.bf16 %v1122_v10, %v1121_v9 }
 0x5a5   : > { %1475 = vmatpush3.bf16.msra.mxu0 %v1474_v17 }
 0x5a6   : > { %1493 = vmatprep.subr.bf16.mxu0 %v1492_v60  ;;  %v1029_v60 = vrot.slane %v1020_v58, %v461_v34 }
 0x66d   : > { %v872_v18 = vpop.f32.mrb[8].mxu1 }
 0x66e   : > { %877 = vrot.lane.b32.xlu0 %v872_v18, %s1651_s16  ;;  %v1428_v19 = vpop.f32.mrb[9].mxu1  ;;  %s1260_s16 = scalar_lea.sflag [#allocation4], %s429_s20 }
 0x6e0   : > { %v878_v20 = vpop.permute.xlu0 %877 }
 0x6e1   : > { %881 = vst.msk [vmem:[#allocation2] sm:$0xff] %vm880_vm5, %v878_v20  ;;  %v1347_v20 = vld [vmem:[%s2136_s5] ss:$0 sm:$0xff] }
 0x6e8   : > { %v882_v21 = vld [vmem:[#allocation2] sm:$0xff] }
 0x6e9   : > { %1446 = vmatmul.mubr.msk.f32.vlgmr.msra.gmra.mrb[0].mxu0 %vm465_vm0, %v882_v21 }
 0x6ea   : > { %1495 = vmatpush3.bf16.msra.mxu0 %v1494_v0 }
 0x6eb   : > { %1497 = vmatprep.subr.bf16.mxu0 %v1496_v1 }
 0x6ee   : > { %1499 = vmatpush3.bf16.msra.mxu0 %v1498_v6 }
 0x6ef   : > { %1501 = vmatprep.subr.bf16.mxu0 %v1500_v8 }
 0x6f2   : > { %1503 = vmatpush3.bf16.msra.mxu0 %v1502_v11 }
 0x7bc   : > { %v967_v23 = vpop.f32.mrb[0].mxu0 }
 0x7bd   : > { %v968_v24 = vadd.f32 %v1345_v22, %v967_v23  ;;  %v1447_v26 = vpop.f32.mrb[1].mxu0  ;;  %v1348_v22 = vld [vmem:[%s2137_s6] ss:$0 sm:$0xff] }
 0x7be   : > { %v1139_v26 = vld [vmem:[%s2140_s9 + $0xb0] sm:$0xff] }
 0x7bf   : > { %v1902_v29 = vadd.f32 %v968_v24, %v1828_v25  ;;  %v1476_v25 = vpack.c.bf16 %v1007_v35, %v1005_v33  ;;  %v1141_v35 = vld [vmem:[%s2140_s9 + $0xc0] sm:$0xff] }
 0x7c1   : > { %v974_v30 = vsel %vm465_vm0, %v1902_v29, 0.0  ;;  %v979_v31 = vmul.f32 %v1902_v29, %v1902_v29  ;;  %1477 = vmatprep.subr.bf16.mxu1 %v1476_v25  ;;  %v1142_v25 = vld [vmem:[%s2140_s9 + $0xc8] sm:$0xff] }
 0x7c2   : > { %975 = vadd.xlane.f32.xlu1 %v974_v30  ;;  %1479 = vmatpush1.bf16.msra.mxu1 %v1478_v38  ;;  %v1508_v36 = vpack.c.bf16 %v1142_v25, %v1141_v35  ;;  %v1126_v38 = vld [vmem:[%s2140_s9 + $0x48] sm:$0xff] }
 0x7c3   : > { %v980_v32 = vsel %vm465_vm0, %v979_v31, 0.0  ;;  %1481 = vmatprep.subr.bf16.mxu1 %v1480_v41  ;;  %v1123_v31 = vld [vmem:[%s2140_s9 + $0x30] sm:$0xff]  ;;  %v1510_v39 = vpack.c.bf16 %v1126_v38, %v1125_v37  ;;  %v1144_v41 = vld [vmem:[%s2140_s9 + $0xd8] sm:$0xff] }
 0x7c4   : > { %981 = vadd.xlane.f32.xlu0 %v980_v32  ;;  %v1124_v32 = vld [vmem:[%s2140_s9 + $0x38] sm:$0xff]  ;;  %v1512_v42 = vpack.c.bf16 %v1144_v41, %v1143_v40 }
 0x7c5   : > { %v1506_v33 = vpack.c.bf16 %v1124_v32, %v1123_v31  ;;  %v1352_v31 = vld [vmem:[%s2143_s12] ss:$0 sm:$0xff] }
 0x7c6   : > { %1483 = vmatpush1.bf16.msra.mxu1 %v1482_v44  ;;  %v1128_v44 = vld [vmem:[%s2140_s9 + $0x58] sm:$0xff] }
 0x7c7   : > { %1485 = vmatprep.subr.bf16.mxu1 %v1484_v47  ;;  %v1514_v45 = vpack.c.bf16 %v1128_v44, %v1127_v43  ;;  %v1146_v47 = vld [vmem:[%s2140_s9 + $0xe8] sm:$0xff] }
 0x7c8   : > { %v1516_v48 = vpack.c.bf16 %v1146_v47, %v1145_v46 }
 0x7ca   : > { %1487 = vmatpush1.bf16.msra.mxu1 %v1486_v50  ;;  %v1130_v50 = vld [vmem:[%s2140_s9 + $0x68] sm:$0xff] }
 0x7cb   : > { %1489 = vmatprep.subr.bf16.mxu1 %v1488_v54  ;;  %v1518_v51 = vpack.c.bf16 %v1130_v50, %v1129_v49  ;;  %v1520_v54 = vpack.c.bf16 %v1148_v53, %v1147_v52 }
 0x7ce   : > { %1491 = vmatpush1.bf16.msra.mxu1 %v1490_v56  ;;  %v1132_v56 = vld [vmem:[%s2140_s9 + $0x78] sm:$0xff] }
 0x7cf   : > { %v1522_v57 = vpack.c.bf16 %v1132_v56, %v1131_v55 }
 0x84f   : > { %v976_v7 = vpop.xlane.xlu1 %975 }
 0x850   : > { %v978_v12 = vmul.f32 0.015625, %v976_v7 }
 0x851   : > { %v982_v13 = vpop.xlane.xlu0 %981 }
 0x852   : > { %v984_v14 = vmul.f32 %v978_v12, %v978_v12  ;;  %v983_v15 = vmul.f32 0.015625, %v982_v13  ;;  %v986_v18 = vsub.f32 %v1902_v29, %v978_v12  ;;  %v1140_v29 = vld [vmem:[%s2140_s9 + $0xb8] sm:$0xff] }
 0x853   : > { %v1504_v30 = vpack.c.bf16 %v1140_v29, %v1139_v26  ;;  %v1351_v29 = vld [vmem:[%s2142_s11] ss:$0 sm:$0xff] }
 0x854   : > { %v985_v16 = vsub.f32 %v983_v15, %v984_v14 }
 0x855   : > { %1505 = vmatprep.subr.bf16.mxu0 %v1504_v30 }
 0x856   : > { %v987_v17 = vadd.f32 1e-05, %v985_v16  ;;  %1507 = vmatpush3.bf16.msra.mxu0 %v1506_v33 }
 0x857   : > { %1509 = vmatprep.subr.bf16.mxu0 %v1508_v36 }
 0x858   : > { %1577 = vrsqrt.f32 %v987_v17 }
 0x85a   : > { %1511 = vmatpush3.bf16.msra.mxu0 %v1510_v39 }
 0x85b   : > { %1513 = vmatprep.subr.bf16.mxu0 %v1512_v42 }
 0x85e   : > { %1515 = vmatpush3.bf16.msra.mxu0 %v1514_v45 }
 0x85f   : > { %1517 = vmatprep.subr.bf16.mxu0 %v1516_v48 }
 0x862   : > { %v1578_v19 = vpop.eup %1577  ;;  %1519 = vmatpush3.bf16.msra.mxu0 %v1518_v51 }
 0x863   : > { %v989_v21 = vmul.f32 %v1578_v19, %v986_v18  ;;  %1521 = vmatprep.subr.bf16.mxu0 %v1520_v54 }
 0x865   : > { %v996_v23 = vmul.f32 %v1347_v20, %v989_v21 }
 0x866   : > { %1523 = vmatpush3.bf16.msra.mxu0 %v1522_v57 }
 0x867   : > { %v2000_v24 = vadd.f32 %v1348_v22, %v996_v23 }
 0x869   : > { %1349 = vmatmul.mubr.msk.f32.vlgmr.msra.gmra.mrb[10].mxu1 %vm465_vm0, %v2000_v24 }
 0x93c   : > { %v1101_v61 = vpop.f32.mrb[10].mxu1 }
 0x93d   : > { %v1102_v62 = vadd.f32 %v1101_v61, %v1025_v59  ;;  %v1103_v63 = vpop.f32.mrb[11].mxu1 }
 0x93e   : > { %v1104_v0 = vadd.f32 %v1103_v63, %v1029_v60 }
 0x93f   : > { %v1109_v1 = vmul.f32 0.70710677, %v1102_v62  ;;  %v1106_v9 = vmul.f32 0.5, %v1102_v62 }
 0x940   : > { %v1110_v2 = vmul.f32 0.70710677, %v1104_v0  ;;  %v1107_v6 = vmul.f32 0.5, %v1104_v0 }
 0x941   : > { %1579 = verf.f32 %v1109_v1 }
 0x942   : > { %1581 = verf.f32 %v1110_v2 }
 0x94b   : > { %v1580_v3 = vpop.eup %1579 }
 0x94c   : > { %v1582_v4 = vpop.eup %1581  ;;  %v1113_v5 = vadd.f32 1.0, %v1580_v3 }
 0x94d   : > { %v1114_v8 = vadd.f32 1.0, %v1582_v4 }
 0x94e   : > { %v1115_v11 = vmul.f32 %v1113_v5, %v1106_v9 }
 0x94f   : > { %v1116_v10 = vmul.f32 %v1114_v8, %v1107_v6 }
 0x951   : > { %1220 = vmatprep.mubr.f32.mxu0 %v1116_v10 }
 0x952   : > { %1221 = vmatmul.mubr.f32.vlgmr.msra.gmra.mrb[2].mxu0 %v1115_v11 }
 0xa25   : > { %v1406_v27 = vpop.f32.mrb[2].mxu0 }
 0xa26   : > { %v1407_v34 = vpop.f32.mrb[3].mxu0 }
 0xa27   : > { %v1408_v7 = vadd.f32 %v1407_v34, %v1406_v27 }
 0xa29   : > { %v1223_v12 = vadd.f32 %v1408_v7, %v1350_v28 }
 0xa2b   : > { %v1226_v13 = vadd.f32 %v1223_v12, %v2000_v24 }
 0xa2d   : > { %v1229_v14 = vsel %vm465_vm0, %v1226_v13, 0.0  ;;  %v1233_v15 = vmul.f32 %v1226_v13, %v1226_v13 }
 0xa2e   : > { %1230 = vadd.xlane.f32.xlu1 %v1229_v14 }
 0xa2f   : > { %v1234_v16 = vsel %vm465_vm0, %v1233_v15, 0.0 }
 0xa32   : > { %1235 = vadd.xlane.f32.xlu1 %v1234_v16 }
 0xabb   : > { %v1231_v17 = vpop.xlane.xlu1 %1230 }
 0xabc   : > { %v1232_v18 = vmul.f32 0.015625, %v1231_v17 }
 0xabe   : > { %v1238_v20 = vmul.f32 %v1232_v18, %v1232_v18  ;;  %v1240_v26 = vsub.f32 %v1226_v13, %v1232_v18 }
 0xabf   : > { %v1236_v19 = vpop.xlane.xlu1 %1235 }
 0xac0   : > { %v1237_v21 = vmul.f32 0.015625, %v1236_v19 }
 0xac2   : > { %v1239_v22 = vsub.f32 %v1237_v21, %v1238_v20 }
 0xac4   : > { %v1241_v23 = vadd.f32 1e-05, %v1239_v22 }
 0xac6   : > { %1583 = vrsqrt.f32 %v1241_v23 }
 0xad0   : > { %v1584_v24 = vpop.eup %1583 }
 0xad1   : > { %v1243_v30 = vmul.f32 %v1584_v24, %v1240_v26 }
 0xad3   : > { %v1250_v32 = vmul.f32 %v1351_v29, %v1243_v30 }
 0xad5   : > { %v1257_v33 = vadd.f32 %v1352_v31, %v1250_v32 }
 0xad7   : > { %1258 = vst.msk [vmem:[%s431_s30] sm:$0xff] %vm465_vm0, %v1257_v33 }
 0xad8   : > { %1598 = shalt.err (!%p1595_p3)
}
 0xad9   : > { %s1599_s20 = scalar_lea.hbm %s2088_s1, 128  ;;  %s1603_s30 = scalar_lea.hbm %s2144_s13, 256 }
 0xada   : > { %p1600_p4 = scmp.ne.s32.totalorder %s2088_s1, %s1599_s20  ;;  %p1604_p9 = scmp.lt.u32.totalorder %s2088_s1, %s2144_s13 }
 0xadb   : > { %p1605_p10 = scmp.lt.u32.totalorder %s1603_s30, %s1599_s20  ;;  %p1607_p12 = scmp.lt.u32.totalorder %s1599_s20, %s2088_s1 }
 0xadc   : > { %p1601_p7 = pnand %p1600_p4, %p1764_p5 }
 0xadd   : > { %p1606_p11 = por %p1605_p10, %p1604_p9 }
 0xade   : > { %p1602_p8 = pneg %p1601_p7 }
 0xadf   : > { %p1608_p13 = por %p1607_p12, %p1606_p11 }
 0xae1   : > { %p1609_p0 = pnand %p1608_p13, %p1602_p8 }
 0xae3   : > { %1612 = shalt.err (!%p1609_p0)
}
 0xae4   : > { %1524 = dma.vmem_to_hbm [thread:$0]  (%p1764_p5), %s2090_s27, 128, %s2088_s1, %s1260_s16  }
 0xae5 PF: > { %p1530_p1 = scmp.ge.s32.totalorder %s1647_s28, 2  ;;  %s1285_s0 = sand.u32 1, %s1635_s25  }
 0xae6   : > { %s1286_s29 = scalar_lea.sflag [#allocation4], %s1285_s0 }
 0xae7   : > { %p1527_p2 = pnand %p1530_p1, %p1768_p6 }
 0xae9   : > { %1630 = dma.done.wait (!%p1527_p2), %s1286_s29, 128  }
 0xaea   : > { %1632 = vsyncadd (!%p1527_p2), %s1286_s29, 4294967168  ;;  %s2154_s21 = sld [smem:[#allocation6_spill]]  ;;  %s2155_s27 = sld [smem:[#allocation7_spill]] }
 0xaeb   : > { %p23_p3 = scmp.ge.s32.totalorder %s1751_s14, 4   ;;  %s2156_s25 = smov %s1639_s26 }
 0xaec   : > { %s2158_s28 = smov %s1751_s14 }
 0xaed   :  { %25 = sbr.rel (!%p23_p3) target bundleno = 6 (0x6), region = 107 }
 0xaf0   : > { %s2157_s26 = smov %s2154_s21 }
 0xaf4   :  { %1291 = vsyncpa [#allocation4], 1 }
 0xaf5   :  { %1293 = vsyncpa [#allocation4 + $0x1], 1 }

</bundles_post_ra>
